<compile_context>
chip_gen: v6e
topology: v6e:2x2x1
jax: 0.10.0
libtpu: 0.0.40
codegen_flags: <defaults>
</compile_context>

<pallas_src>
import functools
from math import ceil

import numpy as np
import jax
import jax.numpy as jnp
from jax import lax
from jax.experimental import pallas as pl
from jax.experimental.pallas import tpu as pltpu

_EPS = 1e-20


def _structural_kernel(x_ref, y_ref, row_ref, col_ref, sumx_ref, sumw_ref, *,
                       inv_area, thr):
    M = row_ref.shape[0]
    R = row_ref[...]                       # (M, M) bf16 block-diag row-window op
    C = col_ref[...]                       # (L, L) bf16 block-diag col-window op

    x = x_ref[0].astype(jnp.float32)       # (M, L) packed slab (Gs*H, G*W)
    y = y_ref[0].astype(jnp.float32)

    def box_batch(fields):
        """Zero-padded (2w x 2w) box sums of k (M, L) fields.

        Fields are stacked along sublanes: one wide (k*M, L) @ (L, L) column
        matmul, then k small (M, M) @ (M, L) row matmuls.  All matmul operands
        are bf16 (operators are exact 0/1), accumulation in f32.
        """
        k = len(fields)
        f = jnp.concatenate(fields, axis=0)                     # (k*M, L) f32
        u = jnp.dot(f.astype(jnp.bfloat16), C,
                    preferred_element_type=jnp.float32)         # column box sums
        return [jnp.dot(R, u[i * M:(i + 1) * M, :].astype(jnp.bfloat16),
                        preferred_element_type=jnp.float32)
                for i in range(k)]

    # ---- pass 1: per-pixel local means (field-centered Z-PNN formulation) ----
    sx, sy = box_batch([x, y])
    cx = x - sx * inv_area
    cy = y - sy * inv_area

    # ---- pass 2: box sums of the centered products ----
    sxx, syy, sxy = box_batch([cx * cx, cy * cy, cx * cy])

    sxy = jnp.maximum(sxy, _EPS)                                # clamp(min=eps)
    # TODO(synk): the numerator clamp makes corr > 0, so the clamp(min=-1)
    # below is effectively dead for anti-correlated windows (matches the
    # assumed Z-PNN ccorr; verify against the exact torch ccorr if needed).
    corr = sxy * lax.rsqrt(sxx + _EPS) * lax.rsqrt(syy + _EPS)  # EUP rsqrt x2
    X = 1.0 - jnp.maximum(corr, -1.0)                           # clamp(min=-1)
    weighted = jnp.where(X > thr, X, 0.0)                       # X * X.gt(thr)

    # Lane-dense per-slab partial sums (sublane reduction only); the final
    # lane/slab reduction happens in the wrapper so the grid stays "parallel".
    sumx_ref[...] = jnp.sum(X, axis=0, keepdims=True)[None]         # (1, 1, L)
    sumw_ref[...] = jnp.sum(weighted, axis=0, keepdims=True)[None]  # (1, 1, L)


def _window_operators(H, W, w, G, Gs):
    """Banded 0/1 operators for the zero-padded (2w x 2w) box sum (bf16-exact)."""
    r = np.arange(H)
    dr = r[None, :] - r[:, None]                      # r - i
    Rm = ((dr >= 1 - w) & (dr <= w)).astype(np.float32)          # (H, H)
    c = np.arange(W)
    dc = c[:, None] - c[None, :]                      # c - j
    Cm = ((dc >= 1 - w) & (dc <= w)).astype(np.float32)          # (W, W)
    Rb = np.kron(np.eye(Gs, dtype=np.float32), Rm)               # (Gs*H, Gs*H)
    Cb = np.kron(np.eye(G, dtype=np.float32), Cm)                # (G*W, G*W)
    return jnp.asarray(Rb, dtype=jnp.bfloat16), jnp.asarray(Cb, dtype=jnp.bfloat16)


def _packing(N, H, W):
    """Lane (G) and sublane (Gs) image packing; keeps >= 2 grid steps if N >= 2."""
    lane_imgs = 1 if W >= 128 else max(1, 128 // W)      # fill 128 lanes
    sub_imgs = 1 if H >= 256 else max(1, 256 // H)       # fill up to 256 MXU rows
    per_step = lane_imgs * sub_imgs
    if N >= 2:
        per_step = min(per_step, -(-N // 2))             # >= 2 parallel grid steps
    else:
        per_step = 1
    G = max(1, min(lane_imgs, per_step))
    Gs = max(1, min(sub_imgs, per_step // G))
    S = -(-N // (G * Gs))
    return G, Gs, S


def structural_loss(outputs, labels, xcorr_thr, sigma):
    """Pallas implementation of StructuralLoss.forward.

    outputs, labels: (B, C, H, W) NCHW arrays.
    Returns (Lxcorr, Lxcorr_no_weights) as float32 scalars.
    """
    w = int(ceil(sigma / 2))
    B, C, H, W = outputs.shape
    N = B * C

    G, Gs, S = _packing(N, H, W)
    P = G * Gs
    pad_n = S * P - N
    M, L = Gs * H, G * W

    x = outputs.reshape(N, H, W)
    y = labels.reshape(N, H, W)
    if pad_n:
        # Zero dummy images contribute exactly ~0 to both sums (corr == 1 -> X == 0).
        x = jnp.concatenate([x, jnp.zeros((pad_n, H, W), x.dtype)], axis=0)
        y = jnp.concatenate([y, jnp.zeros((pad_n, H, W), y.dtype)], axis=0)
    # Layout plumbing: (S, Gs, G, H, W) -> slabs of shape (Gs*H, G*W).
    x = x.reshape(S, Gs, G, H, W).transpose(0, 1, 3, 2, 4).reshape(S, M, L)
    y = y.reshape(S, Gs, G, H, W).transpose(0, 1, 3, 2, 4).reshape(S, M, L)

    Rb, Cb = _window_operators(H, W, w, G, Gs)
    inv_area = 1.0 / float((2 * w) * (2 * w))
    kernel = functools.partial(_structural_kernel, inv_area=inv_area,
                               thr=float(xcorr_thr))

    # VMEM budget: double-buffered x/y blocks + double-buffered bf16 operators
    # + ~28 live (M, L) f32-equivalent intermediates, capped per generation.
    itemsize = jnp.dtype(outputs.dtype).itemsize
    est = (2 * 2 * M * L * itemsize            # pipelined x/y input blocks
           + 2 * 2 * (M * M + L * L)           # bf16 R/C operators (double-buffered)
           + 4 * M * L * 28                    # live kernel intermediates (upper bound)
           + (1 << 20))                        # outputs + compiler scratch slack
    try:
        info = pltpu.get_tpu_info()
        cap = int(getattr(info, "vmem_capacity_bytes", 128 * 2**20)) * 3 // 4
    except Exception:                          # pragma: no cover - conservative default
        cap = 48 * 2**20
    vmem_limit = int(min(cap, max(int(est * 1.25), 16 * 2**20)))

    sum_x, sum_w = pl.pallas_call(
        kernel,
        out_shape=(jax.ShapeDtypeStruct((S, 1, L), jnp.float32),
                   jax.ShapeDtypeStruct((S, 1, L), jnp.float32)),
        grid_spec=pltpu.PrefetchScalarGridSpec(
            num_scalar_prefetch=0,
            grid=(S,),
            in_specs=[
                pl.BlockSpec((1, M, L), lambda i: (i, 0, 0)),    # packed outputs
                pl.BlockSpec((1, M, L), lambda i: (i, 0, 0)),    # packed labels
                pl.BlockSpec((M, M), lambda i: (0, 0)),          # row-window op
                pl.BlockSpec((L, L), lambda i: (0, 0)),          # col-window op
            ],
            out_specs=[
                pl.BlockSpec((1, 1, L), lambda i: (i, 0, 0)),    # partial sum X
                pl.BlockSpec((1, 1, L), lambda i: (i, 0, 0)),    # partial sum X*worst
            ],
        ),
        compiler_params=pltpu.CompilerParams(
            dimension_semantics=("parallel",),   # no cross-step state -> megacore OK
            vmem_limit_bytes=vmem_limit),
    )(x, y, Rb, Cb)

    n_elems = float(N * H * W)
    lxcorr = jnp.sum(sum_w) / n_elems
    lxcorr_no_weights = jnp.sum(sum_x) / n_elems
    return lxcorr, lxcorr_no_weights


def _reference(outputs, labels, xcorr_thr, sigma):
    """Pure-JAX f32 reference (same box-sum formulation as the torch ccorr)."""
    w = int(ceil(sigma / 2))
    win = 2 * w
    x = outputs.astype(jnp.float32)
    y = labels.astype(jnp.float32)

    def box(img):
        H, W = img.shape[-2:]
        p = jnp.pad(img, ((0, 0), (0, 0), (w, w), (w, w)))
        s = jnp.zeros_like(img)
        for a in range(1, win + 1):
            for b in range(1, win + 1):
                s = s + p[..., a:a + H, b:b + W]
        return s

    mu_x = box(x) / (win * win)
    mu_y = box(y) / (win * win)
    cx = x - mu_x
    cy = y - mu_y
    sxx = box(cx * cx)
    syy = box(cy * cy)
    sxy = jnp.maximum(box(cx * cy), _EPS)
    corr = sxy / (jnp.sqrt(sxx * syy) + _EPS)
    X = 1.0 - jnp.maximum(corr, -1.0)
    lnw = jnp.mean(X)
    lx = jnp.mean(X * (X > xcorr_thr).astype(jnp.float32))
    return lx, lnw


if __name__ == "__main__":
    key = jax.random.PRNGKey(0)
    k1, k2 = jax.random.split(key)

    B, C, H, W = 2, 4, 16, 16
    sigma = 4.0          # -> scale = ceil(sigma / 2) = 2, window 4x4
    xcorr_thr = 0.05

    outputs = jax.random.normal(k1, (B, C, H, W), dtype=jnp.float32)
    labels = outputs + jax.random.normal(k2, (B, C, H, W), dtype=jnp.float32)

    lxcorr, lxcorr_nw = structural_loss(outputs, labels, xcorr_thr, sigma)
    jax.block_until_ready((lxcorr, lxcorr_nw))

    ref_l, ref_nw = _reference(outputs, labels, xcorr_thr, sigma)
    # Tolerance sized for the bf16 MXU box-sum path + EUP rsqrt (per-pixel corr
    # error ~0.5%; the mean error over all pixels is typically O(1e-3)).
    assert abs(float(lxcorr) - float(ref_l)) < 1e-2, (float(lxcorr), float(ref_l))
    assert abs(float(lxcorr_nw) - float(ref_nw)) < 1e-2, (float(lxcorr_nw), float(ref_nw))

    print("KERNEL_OK")
</pallas_src>

<mosaic_0001>
module attributes {stable_mosaic.version = 11 : i64} {
  func.func @_structural_kernel(%arg0: i32, %arg1: memref<1x16x64xf32, #tpu.memory_space<vmem>>, %arg2: memref<1x16x64xf32, #tpu.memory_space<vmem>>, %arg3: memref<16x16xbf16, #tpu.memory_space<vmem>>, %arg4: memref<64x64xbf16, #tpu.memory_space<vmem>>, %arg5: memref<1x1x64xf32, #tpu.memory_space<vmem>>, %arg6: memref<1x1x64xf32, #tpu.memory_space<vmem>>) attributes {dimension_semantics = [#tpu.dimension_semantics<parallel>], iteration_bounds = array<i64: 2>, scalar_prefetch = 0 : i64, scratch_operands = 0 : i64, tpu.core_type = #tpu.core_type<tc>, window_params = [{transform_indices = @transform_0, window_bounds = array<i64: 1, 16, 64>}, {transform_indices = @transform_1, window_bounds = array<i64: 1, 16, 64>}, {pipeline_mode = #tpu.pipeline_mode<synchronous>, transform_indices = @transform_2, window_bounds = array<i64: 16, 16>}, {pipeline_mode = #tpu.pipeline_mode<synchronous>, transform_indices = @transform_3, window_bounds = array<i64: 64, 64>}, {transform_indices = @transform_4, window_bounds = array<i64: 1, 1, 64>}, {transform_indices = @transform_5, window_bounds = array<i64: 1, 1, 64>}]} {
    %c0 = arith.constant 0 : index
    %c0_0 = arith.constant 0 : index
    %0 = vector.load %arg3[%c0, %c0_0] : memref<16x16xbf16, #tpu.memory_space<vmem>>, vector<16x16xbf16>
    %c0_1 = arith.constant 0 : index
    %c0_2 = arith.constant 0 : index
    %1 = vector.load %arg4[%c0_1, %c0_2] : memref<64x64xbf16, #tpu.memory_space<vmem>>, vector<64x64xbf16>
    %c0_3 = arith.constant 0 : index
    %c0_4 = arith.constant 0 : index
    %c0_5 = arith.constant 0 : index
    %2 = vector.load %arg1[%c0_3, %c0_4, %c0_5] : memref<1x16x64xf32, #tpu.memory_space<vmem>>, vector<1x16x64xf32>
    %3 = vector.shape_cast %2 : vector<1x16x64xf32> to vector<16x64xf32>
    %c0_6 = arith.constant 0 : index
    %c0_7 = arith.constant 0 : index
    %c0_8 = arith.constant 0 : index
    %4 = vector.load %arg2[%c0_6, %c0_7, %c0_8] : memref<1x16x64xf32, #tpu.memory_space<vmem>>, vector<1x16x64xf32>
    %5 = vector.shape_cast %4 : vector<1x16x64xf32> to vector<16x64xf32>
    %6 = tpu.concatenate %3, %5 in 0 : vector<16x64xf32>, vector<16x64xf32> -> vector<32x64xf32>
    %7 = arith.truncf %6 : vector<32x64xf32> to vector<32x64xbf16>
    %cst = arith.constant dense<0.000000e+00> : vector<32x64xf32>
    %8 = tpu.matmul %7, %1, %cst {dimension_numbers = #tpu.dot_dimension_numbers<[1], [0], [0], [1], [0, 0, 1, 1], [], []>} : vector<32x64xbf16>, vector<64x64xbf16>, vector<32x64xf32> -> vector<32x64xf32>
    %9 = vector.extract_strided_slice %8 {offsets = [0, 0], sizes = [16, 64], strides = [1, 1]} : vector<32x64xf32> to vector<16x64xf32>
    %10 = arith.truncf %9 : vector<16x64xf32> to vector<16x64xbf16>
    %cst_9 = arith.constant dense<0.000000e+00> : vector<16x64xf32>
    %11 = tpu.matmul %0, %10, %cst_9 {dimension_numbers = #tpu.dot_dimension_numbers<[1], [0], [0], [1], [0, 0, 1, 1], [], []>} : vector<16x16xbf16>, vector<16x64xbf16>, vector<16x64xf32> -> vector<16x64xf32>
    %12 = vector.extract_strided_slice %8 {offsets = [16, 0], sizes = [16, 64], strides = [1, 1]} : vector<32x64xf32> to vector<16x64xf32>
    %13 = arith.truncf %12 : vector<16x64xf32> to vector<16x64xbf16>
    %cst_10 = arith.constant dense<0.000000e+00> : vector<16x64xf32>
    %14 = tpu.matmul %0, %13, %cst_10 {dimension_numbers = #tpu.dot_dimension_numbers<[1], [0], [0], [1], [0, 0, 1, 1], [], []>} : vector<16x16xbf16>, vector<16x64xbf16>, vector<16x64xf32> -> vector<16x64xf32>
    %cst_11 = arith.constant 6.250000e-02 : f32
    %15 = vector.broadcast %cst_11 : f32 to vector<16x64xf32>
    %16 = arith.mulf %11, %15 : vector<16x64xf32>
    %17 = arith.subf %3, %16 : vector<16x64xf32>
    %cst_12 = arith.constant 6.250000e-02 : f32
    %18 = vector.broadcast %cst_12 : f32 to vector<16x64xf32>
    %19 = arith.mulf %14, %18 : vector<16x64xf32>
    %20 = arith.subf %5, %19 : vector<16x64xf32>
    %21 = arith.mulf %17, %17 : vector<16x64xf32>
    %22 = arith.mulf %20, %20 : vector<16x64xf32>
    %23 = arith.mulf %17, %20 : vector<16x64xf32>
    %24 = tpu.concatenate %21, %22, %23 in 0 : vector<16x64xf32>, vector<16x64xf32>, vector<16x64xf32> -> vector<48x64xf32>
    %25 = arith.truncf %24 : vector<48x64xf32> to vector<48x64xbf16>
    %cst_13 = arith.constant dense<0.000000e+00> : vector<48x64xf32>
    %26 = tpu.matmul %25, %1, %cst_13 {dimension_numbers = #tpu.dot_dimension_numbers<[1], [0], [0], [1], [0, 0, 1, 1], [], []>} : vector<48x64xbf16>, vector<64x64xbf16>, vector<48x64xf32> -> vector<48x64xf32>
    %27 = vector.extract_strided_slice %26 {offsets = [0, 0], sizes = [16, 64], strides = [1, 1]} : vector<48x64xf32> to vector<16x64xf32>
    %28 = arith.truncf %27 : vector<16x64xf32> to vector<16x64xbf16>
    %cst_14 = arith.constant dense<0.000000e+00> : vector<16x64xf32>
    %29 = tpu.matmul %0, %28, %cst_14 {dimension_numbers = #tpu.dot_dimension_numbers<[1], [0], [0], [1], [0, 0, 1, 1], [], []>} : vector<16x16xbf16>, vector<16x64xbf16>, vector<16x64xf32> -> vector<16x64xf32>
    %30 = vector.extract_strided_slice %26 {offsets = [16, 0], sizes = [16, 64], strides = [1, 1]} : vector<48x64xf32> to vector<16x64xf32>
    %31 = arith.truncf %30 : vector<16x64xf32> to vector<16x64xbf16>
    %cst_15 = arith.constant dense<0.000000e+00> : vector<16x64xf32>
    %32 = tpu.matmul %0, %31, %cst_15 {dimension_numbers = #tpu.dot_dimension_numbers<[1], [0], [0], [1], [0, 0, 1, 1], [], []>} : vector<16x16xbf16>, vector<16x64xbf16>, vector<16x64xf32> -> vector<16x64xf32>
    %33 = vector.extract_strided_slice %26 {offsets = [32, 0], sizes = [16, 64], strides = [1, 1]} : vector<48x64xf32> to vector<16x64xf32>
    %34 = arith.truncf %33 : vector<16x64xf32> to vector<16x64xbf16>
    %cst_16 = arith.constant dense<0.000000e+00> : vector<16x64xf32>
    %35 = tpu.matmul %0, %34, %cst_16 {dimension_numbers = #tpu.dot_dimension_numbers<[1], [0], [0], [1], [0, 0, 1, 1], [], []>} : vector<16x16xbf16>, vector<16x64xbf16>, vector<16x64xf32> -> vector<16x64xf32>
    %cst_17 = arith.constant 9.99999968E-21 : f32
    %36 = vector.broadcast %cst_17 : f32 to vector<16x64xf32>
    %37 = arith.maximumf %35, %36 : vector<16x64xf32>
    %cst_18 = arith.constant 9.99999968E-21 : f32
    %38 = vector.broadcast %cst_18 : f32 to vector<16x64xf32>
    %39 = arith.addf %29, %38 : vector<16x64xf32>
    %40 = math.rsqrt %39 : vector<16x64xf32>
    %41 = arith.mulf %37, %40 : vector<16x64xf32>
    %cst_19 = arith.constant 9.99999968E-21 : f32
    %42 = vector.broadcast %cst_19 : f32 to vector<16x64xf32>
    %43 = arith.addf %32, %42 : vector<16x64xf32>
    %44 = math.rsqrt %43 : vector<16x64xf32>
    %45 = arith.mulf %41, %44 : vector<16x64xf32>
    %cst_20 = arith.constant -1.000000e+00 : f32
    %46 = vector.broadcast %cst_20 : f32 to vector<16x64xf32>
    %47 = arith.maximumf %45, %46 : vector<16x64xf32>
    %cst_21 = arith.constant 1.000000e+00 : f32
    %48 = vector.broadcast %cst_21 : f32 to vector<16x64xf32>
    %49 = arith.subf %48, %47 : vector<16x64xf32>
    %cst_22 = arith.constant 5.000000e-02 : f32
    %50 = vector.broadcast %cst_22 : f32 to vector<16x64xf32>
    %51 = arith.cmpf ogt, %49, %50 : vector<16x64xf32>
    %cst_23 = arith.constant 0.000000e+00 : f32
    %52 = vector.broadcast %cst_23 : f32 to vector<16x64xf32>
    %53 = arith.select %51, %49, %52 : vector<16x64xi1>, vector<16x64xf32>
    %cst_24 = arith.constant dense<0.000000e+00> : vector<64xf32>
    %54 = vector.multi_reduction <add>, %49, %cst_24 [0] : vector<16x64xf32> to vector<64xf32>
    %55 = vector.shape_cast %54 : vector<64xf32> to vector<1x64xf32>
    %56 = vector.shape_cast %55 : vector<1x64xf32> to vector<1x1x64xf32>
    %c0_25 = arith.constant 0 : index
    %c0_26 = arith.constant 0 : index
    %c0_27 = arith.constant 0 : index
    %57 = vector.load %arg5[%c0_25, %c0_26, %c0_27] : memref<1x1x64xf32, #tpu.memory_space<vmem>>, vector<1x1x64xf32>
    tpu.vector_store %arg5[%c0_25, %c0_26, %c0_27], %56 {strides = array<i32>} : memref<1x1x64xf32, #tpu.memory_space<vmem>>, vector<1x1x64xf32>,
    %cst_28 = arith.constant dense<0.000000e+00> : vector<64xf32>
    %58 = vector.multi_reduction <add>, %53, %cst_28 [0] : vector<16x64xf32> to vector<64xf32>
    %59 = vector.shape_cast %58 : vector<64xf32> to vector<1x64xf32>
    %60 = vector.shape_cast %59 : vector<1x64xf32> to vector<1x1x64xf32>
    %c0_29 = arith.constant 0 : index
    %c0_30 = arith.constant 0 : index
    %c0_31 = arith.constant 0 : index
    %61 = vector.load %arg6[%c0_29, %c0_30, %c0_31] : memref<1x1x64xf32, #tpu.memory_space<vmem>>, vector<1x1x64xf32>
    tpu.vector_store %arg6[%c0_29, %c0_30, %c0_31], %60 {strides = array<i32>} : memref<1x1x64xf32, #tpu.memory_space<vmem>>, vector<1x1x64xf32>,
    return
  }
  func.func @transform_0(%arg0: i32) -> (i32, i32, i32) {
    %c0_i32 = arith.constant 0 : i32
    %c0_i32_0 = arith.constant 0 : i32
    %c0_i32_1 = arith.constant 0 : i32
    return %arg0, %c0_i32, %c0_i32_0 : i32, i32, i32
  }
  func.func @transform_1(%arg0: i32) -> (i32, i32, i32) {
    %c0_i32 = arith.constant 0 : i32
    %c0_i32_0 = arith.constant 0 : i32
    %c0_i32_1 = arith.constant 0 : i32
    return %arg0, %c0_i32, %c0_i32_0 : i32, i32, i32
  }
  func.func @transform_2(%arg0: i32) -> (i32, i32) {
    %c0_i32 = arith.constant 0 : i32
    %c0_i32_0 = arith.constant 0 : i32
    %c0_i32_1 = arith.constant 0 : i32
    return %c0_i32, %c0_i32_0 : i32, i32
  }
  func.func @transform_3(%arg0: i32) -> (i32, i32) {
    %c0_i32 = arith.constant 0 : i32
    %c0_i32_0 = arith.constant 0 : i32
    %c0_i32_1 = arith.constant 0 : i32
    return %c0_i32, %c0_i32_0 : i32, i32
  }
  func.func @transform_4(%arg0: i32) -> (i32, i32, i32) {
    %c0_i32 = arith.constant 0 : i32
    %c0_i32_0 = arith.constant 0 : i32
    %c0_i32_1 = arith.constant 0 : i32
    return %arg0, %c0_i32, %c0_i32_0 : i32, i32, i32
  }
  func.func @transform_5(%arg0: i32) -> (i32, i32, i32) {
    %c0_i32 = arith.constant 0 : i32
    %c0_i32_0 = arith.constant 0 : i32
    %c0_i32_1 = arith.constant 0 : i32
    return %arg0, %c0_i32, %c0_i32_0 : i32, i32, i32
  }
}

</mosaic_0001>

<bundles_post_ra>
// kernel: tpu_custom_call.1
= control target key start
LH: loop header
LB: loop body
LE: loop exit
PB: predicated region body
PF: predicated region fallthrough
CT: control target
= control target key end

     0   :  { %s1728_s0 = inlined_call_operand.hbm [shape: f32[2,16,64], index: 0, kind: input, shape index: {}]   ;;  %s1729_s1 = inlined_call_operand.hbm [shape: f32[2,16,64], index: 1, kind: input, shape index: {}]   ;;  %s1730_s2 = inlined_call_operand.hbm [shape: bf16[16,16], index: 2, kind: input, shape index: {}]   ;;  %s1731_s3 = inlined_call_operand.hbm [shape: bf16[64,64], index: 3, kind: input, shape index: {}]   ;;  %s1732_s4 = inlined_call_operand.hbm [shape: f32[2,1,64], index: 4, kind: output, shape index: {0}]   ;;  %s1733_s5 = inlined_call_operand.hbm [shape: f32[2,1,64], index: 5, kind: output, shape index: {1}]  }
   0x1   :  { %1737 = sst [smem:[#allocation19_spill]] %s1728_s0 }
   0x2   :  { %1738 = sst [smem:[#allocation20_spill]] %s1730_s2 }
   0x3   :  { %11 = vsyncpa [#allocation3], 0 }
   0x4   :  { %13 = vsyncpa [#allocation3 + $0x1], 0 }
   0x5   :  { %14 = vsyncpa [#allocation6], 0 }
   0x6   :  { %16 = vsyncpa [#allocation6 + $0x1], 0 }
   0x7   :  { %17 = vsyncpa [#allocation9], 0 }
   0x8   :  { %18 = vsyncpa [#allocation4], 0 }
   0x9   :  { %20 = vsyncpa [#allocation4 + $0x1], 0 }
   0xa   :  { %21 = vsyncpa [#allocation12], 0 }
   0xb   :  { %23 = vsyncpa [#allocation12 + $0x1], 0  ;;  %s1401_s18 = smov 0   ;;  %s1403_s19 = smov 0  }
   0xc   :  { %s1405_s20 = smov 0   ;;  %s1407_s21 = smov 0  }
   0xd LB: > { %s1422_s22 = sadd.s32 4294967295, %s1357_s21   ;;  %s925_s23 = sadd.s32 4294967294, %s1357_s21   ;;  %s1357_s21 = sphi %s1407_s21, %s1759_s21   ;;  %s1353_s20 = sphi %s1405_s20, %s1758_s20   ;;  %s1349_s19 = sphi %s1403_s19, %s1757_s19   ;;  %s1345_s18 = sphi %s1401_s18, %s1756_s18  }
   0xe   : > { %p49_p0 = scmp.ne.s32.totalorder %s1349_s19, %s1345_s18  ;;  %p1734_p1 = scmp.eq.s32.totalorder %s1422_s22, 0 }
   0xf   : > { %p147_p3 = scmp.eq.s32.totalorder %s925_s23, 1  ;;  %p926_p5 = scmp.ge.s32.totalorder %s1357_s21, 1 }
  0x10   : > { %p1431_p4 = por %p1734_p1, %p49_p0  ;;  %p180_p7 = scmp.lt.s32.totalorder %s1357_s21, 3 }
  0x11   : > { %p1436_p6 = por %p147_p3, %p49_p0  ;;  %s1359_s27 = smov [#allocation7]  }
  0x12   : > { %s1739_s24 = scalar_select %p1431_p4, 1, 0 }
  0x13   : > { %s1740_s25 = scalar_select %p1436_p6, 1, 0 }
  0x14   : > { %p1441_p8 = pnand %p926_p5, %p180_p7  ;;  %s192_s28 = sshll.u32 %s1359_s27, 4  ;;  %s193_s28 = int_to_ptr.vmem [resolvable:$true] %s192_s28 }
  0x15   : > { %s1360_s30 = smov [#allocation8]   ;;  %s1154_s7 = scalar_lea.vmem %s193_s28, 128 }
  0x16   : > { %p1063_p9 = pneg %p1441_p8  ;;  %s205_s6 = sshll.u32 %s1360_s30, 4  ;;  %s206_s6 = int_to_ptr.vmem [resolvable:$true] %s205_s6 }
  0x17   : > { %p1155_p13 = scmp.ne.s32.totalorder %s193_s28, %s1154_s7  ;;  %p1162_p5 = scmp.lt.s32.totalorder %s193_s28, %s193_s28 }
  0x18   : > { %p1450_p11 = pnand %p1063_p9, %p1734_p1  ;;  %p1163_p7 = scmp.lt.s32.totalorder %s1154_s7, %s1154_s7 }
  0x1a   : > { %p1145_p12 = pneg %p1450_p11  ;;  %p1164_p10 = por %p1163_p7, %p1162_p5 }
  0x1c   : > { %p1157_p0 = pnand %p1155_p13, %p1145_p12 }
  0x1e   : > { %p1158_p3 = pneg %p1157_p0 }
  0x20   : > { %p1165_p9 = pnand %p1164_p10, %p1158_p3 }
  0x22   : > { %1168 = shalt.err (!%p1165_p9)
}
  0x23   : > { %s1361_s8 = smov 64   ;;  %s1362_s9 = smov 4  }
  0x24   : > { %s1743_s2 = sld [smem:[#allocation20_spill]]  ;;  %s1180_s12 = scalar_lea.vmem %s206_s6, 512 }
  0x25   : > { %p1181_p1 = scmp.ne.s32.totalorder %s206_s6, %s1180_s12  ;;  %p1188_p2 = scmp.lt.s32.totalorder %s206_s6, %s206_s6 }
  0x26   : > { %p1189_p6 = scmp.lt.s32.totalorder %s1180_s12, %s1180_s12 }
  0x27   : > { %p1183_p13 = pnand %p1181_p1, %p1145_p12 }
  0x28   : > { %p1190_p5 = por %p1189_p6, %p1188_p2 }
  0x29   : > { %p1184_p0 = pneg %p1183_p13 }
  0x2a   : > { %1066 = dma.hbm_to_vmem [thread:$0]  (!%p1450_p11), %s1743_s2, 128, %s193_s28, [#allocation6], %s1361_s8, %s1361_s8, %s1362_s9  }
  0x2b   : > { %p1191_p10 = pnand %p1190_p5, %p1184_p0 }
  0x2d   : > { %1194 = shalt.err (!%p1191_p10)
}
  0x2e   : > { %1069 = dma.hbm_to_vmem [thread:$0]  (!%p1450_p11), %s1731_s3, 512, %s206_s6, [#allocation9], %s1361_s8, %s1361_s8, %s1362_s9  }
  0x2f   : > { %s1473_s15 = sadd.s32 1, %s1357_s21   ;;  %s36_s16 = sadd.s32 1, %s1353_s20 }
  0x30   : > { %s33_s17 = ssub.s32 %s1357_s21, %s1473_s15  ;;  %p43_p1 = scmp.ne.s32.totalorder %s1353_s20, %s1349_s19 }
  0x31   : > { %p34_p2 = scmp.eq.s32.totalorder %s33_s17, 0  ;;  %p44_p6 = scmp.eq.s32.totalorder %s1357_s21, 0 }
  0x32   : > { %p1744_p12 = scmp.eq.s32.totalorder %s1422_s22, 1  ;;  %p1086_p7 = scmp.lt.s32.totalorder %s1357_s21, 2 }
  0x33   : > { %s1489_s27 = scalar_select %p34_p2, %s1353_s20, %s36_s16  }
  0x34   : > { %p1483_p3 = por %p1744_p12, %p43_p1  ;;  %p45_p9 = por %p44_p6, %p43_p1 }
  0x35   : > { %s219_s28 = sand.u32 1, %s1353_s20   ;;  %s960_s30 = sshll.u32 %s1357_s21, 8 }
  0x36   : > { %s1745_s23 = scalar_select %p1483_p3, 1, 0 }
  0x37   : > { %s1492_s29 = sshll.u32 %s219_s28, 4  ;;  %s1746_s0 = sld [smem:[#allocation19_spill]] }
  0x38   : > { %s223_s9 = scalar_lea.vmem [#allocation2], %s1492_s29  ;;  %p1505_p11 = pnand %p1086_p7, %p45_p9 }
  0x39   : > { %s230_s10 = sshll.u32 %s223_s9, 4  ;;  %s1509_s12 = scalar_lea.sflag [#allocation3], %s219_s28  ;;  %s1503_s10 = int_to_ptr.vmem [resolvable:$true] %s230_s10 }
  0x3a   : > { %p1197_p0 = pneg %p1505_p11 }
  0x3d   : > { %s1500_s8 = scalar_lea.hbm %s1746_s0, %s960_s30  ;;  %s1200_s17 = scalar_lea.hbm %s1746_s0, 512 }
  0x3e   : > { %s1195_s13 = scalar_lea.hbm %s1500_s8, 256  ;;  %p1201_p1 = scmp.lt.s32.totalorder %s1500_s8, %s1746_s0 }
  0x3f   : > { %p1196_p13 = scmp.ne.s32.totalorder %s1500_s8, %s1195_s13  ;;  %p1202_p2 = scmp.lt.s32.totalorder %s1200_s17, %s1195_s13 }
  0x41   : > { %p1198_p5 = pnand %p1197_p0, %p1196_p13  ;;  %p1203_p6 = por %p1202_p2, %p1201_p1 }
  0x43   : > { %p1199_p10 = pneg %p1198_p5 }
  0x45   : > { %p1204_p12 = pnand %p1203_p6, %p1199_p10 }
  0x47   : > { %1207 = shalt.err (!%p1204_p12)
}
  0x48   : > { %s1208_s28 = scalar_lea.vmem %s1503_s10, 256  ;;  %s1363_s9 = smov [#allocation2]  }
  0x49   : > { %p1209_p7 = scmp.ne.s32.totalorder %s1503_s10, %s1208_s28  ;;  %s1213_s14 = sshll.u32 %s1363_s9, 4  ;;  %s1214_s14 = int_to_ptr.vmem [resolvable:$false] %s1213_s14 }
  0x4a   : > { %s1215_s16 = scalar_lea.vmem %s1214_s14, 512  ;;  %p1216_p5 = scmp.lt.s32.totalorder %s1503_s10, %s1214_s14 }
  0x4b   : > { %p1211_p9 = pnand %p1209_p7, %p1197_p0  ;;  %p1217_p3 = scmp.lt.s32.totalorder %s1215_s16, %s1208_s28 }
  0x4d   : > { %p1212_p13 = pneg %p1211_p9  ;;  %p1218_p4 = por %p1217_p3, %p1216_p5 }
  0x4f   : > { %p1219_p1 = pnand %p1218_p4, %p1212_p13 }
  0x51   : > { %1222 = shalt.err (!%p1219_p1)
}
  0x52   : > { %s1364_s13 = smov 128   ;;  %s1365_s17 = smov 8  }
  0x53   : > { %1073 = dma.hbm_to_vmem [thread:$0]  (!%p1505_p11), %s1500_s8, 256, %s1503_s10, %s1509_s12, %s1364_s13, %s1364_s13, %s1365_s17  }
  0x54   : > { %s1544_s28 = scalar_lea.hbm %s1729_s1, %s960_s30  ;;  %s244_s9 = scalar_lea.vmem [#allocation5], %s1492_s29 }
  0x55   : > { %s251_s14 = sshll.u32 %s244_s9, 4  ;;  %s240_s16 = sand.u32 1, %s1357_s21   ;;  %s1547_s14 = int_to_ptr.vmem [resolvable:$true] %s251_s14 }
  0x56   : > { %s241_s0 = scalar_lea.sflag [#allocation6], %s240_s16  ;;  %s1223_s2 = scalar_lea.hbm %s1544_s28, 256 }
  0x57   : > { %p1224_p4 = scmp.ne.s32.totalorder %s1544_s28, %s1223_s2  ;;  %s1228_s30 = scalar_lea.hbm %s1729_s1, 512 }
  0x58   : > { %p1229_p2 = scmp.lt.s32.totalorder %s1544_s28, %s1729_s1  ;;  %p1230_p6 = scmp.lt.s32.totalorder %s1228_s30, %s1223_s2 }
  0x59   : > { %p1226_p3 = pnand %p1224_p4, %p1197_p0 }
  0x5a   : > { %p1231_p12 = por %p1230_p6, %p1229_p2 }
  0x5b   : > { %p1227_p10 = pneg %p1226_p3 }
  0x5d   : > { %p1232_p7 = pnand %p1231_p12, %p1227_p10 }
  0x5f   : > { %1235 = shalt.err (!%p1232_p7)
}
  0x60   : > { %s1236_s29 = scalar_lea.vmem %s1547_s14, 256  ;;  %s1366_s7 = smov [#allocation5]  }
  0x61   : > { %p1237_p9 = scmp.ne.s32.totalorder %s1547_s14, %s1236_s29  ;;  %s1241_s9 = sshll.u32 %s1366_s7, 4  ;;  %s1242_s9 = int_to_ptr.vmem [resolvable:$false] %s1241_s9 }
  0x62   : > { %s1243_s16 = scalar_lea.vmem %s1242_s9, 512  ;;  %p1244_p1 = scmp.lt.s32.totalorder %s1547_s14, %s1242_s9 }
  0x63   : > { %p1239_p13 = pnand %p1237_p9, %p1197_p0  ;;  %p1245_p4 = scmp.lt.s32.totalorder %s1243_s16, %s1236_s29 }
  0x65   : > { %p1240_p5 = pneg %p1239_p13  ;;  %p1246_p3 = por %p1245_p4, %p1244_p1 }
  0x67   : > { %p1247_p2 = pnand %p1246_p3, %p1240_p5 }
  0x69   : > { %1250 = shalt.err (!%p1247_p2)
}
  0x6a   : > { %1076 = dma.hbm_to_vmem [thread:$0]  (!%p1505_p11), %s1544_s28, 256, %s1547_s14, %s241_s0, %s1364_s13, %s1364_s13, %s1365_s17  }
  0x6b   : > { %263 = sbr.rel (%p1441_p8) target bundleno = 1051 (0x41b), region = 36  ;;  %s1578_s2 = sand.u32 (!%p1441_p8), 1, %s1349_s19  }
  0x6c   : > { %s937_s8 = sshll.u32 (!%p1441_p8), %s1578_s2, 4  ;;  %s266_s10 = scalar_lea.sflag (!%p1441_p8), [#allocation3], %s1578_s2 }
  0x6d   : > { %s269_s30 = scalar_lea.vmem (!%p1441_p8), [#allocation2], %s937_s8  ;;  %p1748_p0 = scmp.ne.s32.totalorder (!%p1441_p8), %s1739_s24, 0 }
  0x70   : > { %1320 = dma.done.wait (%p1748_p0), %s266_s10, 256  }
  0x71   : > { %1322 = vsyncadd (%p1748_p0), %s266_s10, 4294967040  ;;  %s274_s0 = sand.u32 1, %s1422_s22   ;;  %s278_s26 = scalar_lea.vmem [#allocation5], %s937_s8 }
  0x72   : > { %s275_s11 = scalar_lea.sflag [#allocation6], %s274_s0 }
  0x73   : > { %1324 = dma.done.wait (%p1748_p0), %s275_s11, 256  }
  0x74   : > { %1326 = vsyncadd (%p1748_p0), %s275_s11, 4294967040  ;;  %p1749_p8 = scmp.eq.s32.totalorder %s1422_s22, 0 }
  0x76   : > { %1328 = dma.done.wait (%p1749_p8), [#allocation6], 128   ;;  %p1750_p11 = pmov %p1749_p8 }
  0x77   : > { %p1751_p10 = pmov %p1749_p8 }
  0x78   : > { %1330 = vsyncadd (%p1750_p11), [#allocation6], 4294967168 }
  0x79   : > { %1332 = dma.done.wait (%p1751_p10), [#allocation9], 512   ;;  %p1752_p6 = pmov %p1749_p8 }
  0x7a   : > { %v1130_v0 = vld [vmem:[#allocation8 + $0x18] sm:$0xff]   ;;  %v1131_v1 = vld [vmem:[#allocation8 + $0x10] sm:$0xff]   ;;  %v1132_v2 = vld [vmem:[#allocation8 + $0x8] sm:$0xff]   ;;  %vm362_vm0 = vcmask 523264   ;;  %v1367_v10 = vmov 0.0   ;;  %vm1368_vm1 = vmmov 0  }
  0x7b   : > { %1334 = vsyncadd (%p1752_p6), [#allocation9], 4294966784  ;;  %985 = vmatprep.subr.bf16.mxu0 %v1130_v0  ;;  %v332_v3 = vld [vmem:[%s269_s30] sm:$0xff]  ;;  %v333_v4 = vld [vmem:[%s269_s30 + $0x8] sm:$0xff]  ;;  %997 = vmatprep.subr.bf16.mxu1 %v1367_v10  ;;  %vm424_vm2 = vcmask 130048   ;;  %s956_s24 = sshll.u32 %s1422_s22, 4 }
  0x7c   : > { %986 = vmatpush3.bf16.msra.mxu0 %v1130_v0  ;;  %v336_v5 = vpack.c.bf16 %v333_v4, %v332_v3  ;;  %v1133_v6 = vld [vmem:[#allocation8] sm:$0xff]   ;;  %v334_v7 = vld [vmem:[%s278_s26] sm:$0xff]  ;;  %999 = vmatprep.mubr.msk.bf16.mxu1 %vm1368_vm1, %v1367_v10  ;;  %s314_s13 = scalar_lea.vmem [#allocation10], %s1578_s2  ;;  %vm747_vm5 = vcmask 516096   ;;  %s320_s28 = scalar_lea.vmem [#allocation11], %s1578_s2 }
  0x7d   : > { %987 = vmatprep.subr.bf16.mxu0 %v1131_v1  ;;  %v335_v8 = vld [vmem:[%s278_s26 + $0x8] sm:$0xff]  ;;  %v1607_v16 = vld [vmem:[#allocation7] sm:$0xff]   ;;  %s776_s17 = sshll.u32 %s314_s13, 4  ;;  %s789_s14 = sshll.u32 %s320_s28, 4  ;;  %s1655_s17 = int_to_ptr.vmem [resolvable:$true] %s776_s17  ;;  %s1663_s14 = int_to_ptr.vmem [resolvable:$true] %s789_s14 }
  0x7e   : > { %993 = vmatprep.mubr.msk.bf16.mxu0 %vm362_vm0, %v336_v5  ;;  %v337_v9 = vpack.c.bf16 %v335_v8, %v334_v7  ;;  %s1653_s29 = scalar_lea.hbm %s1732_s4, %s956_s24  ;;  %s1661_s9 = scalar_lea.hbm %s1733_s5, %s956_s24 }
  0x7f   : > { %s760_s16 = scalar_lea.sflag [#allocation4], %s1578_s2  ;;  %s1251_s8 = scalar_lea.vmem %s1655_s17, 16 }
  0x80   : > { %988 = vmatpush3.bf16.msra.mxu0 %v1131_v1  ;;  %p1252_p12 = scmp.ne.s32.totalorder %s1655_s17, %s1251_s8  ;;  %p1753_p7 = scmp.ne.s32.totalorder %s1745_s23, 0 }
  0x81   : > { %989 = vmatprep.subr.bf16.mxu0 %v1132_v2  ;;  %s1369_s10 = smov [#allocation10]  }
  0x82   : > { %p1253_p9 = pnand %p1252_p12, %p1753_p7  ;;  %s1255_s30 = sshll.u32 %s1369_s10, 4  ;;  %s1256_s30 = int_to_ptr.vmem [resolvable:$false] %s1255_s30 }
  0x83   : > { %s1257_s0 = scalar_lea.vmem %s1256_s30, 32  ;;  %p1258_p5 = scmp.lt.s32.totalorder %s1655_s17, %s1256_s30 }
  0x84   : > { %990 = vmatpush3.bf16.msra.mxu0 %v1132_v2  ;;  %p1254_p13 = pneg %p1253_p9  ;;  %p1259_p1 = scmp.lt.s32.totalorder %s1257_s0, %s1251_s8 }
  0x85   : > { %991 = vmatprep.subr.bf16.mxu0 %v1133_v6 }
  0x86   : > { %p1260_p4 = por %p1259_p1, %p1258_p5 }
  0x88   : > { %992 = vmatpush3.bf16.msra.mxu0 %v1133_v6  ;;  %p1261_p3 = pnand %p1260_p4, %p1254_p13 }
  0x89   : > { %1029 = vmatprep.subr.bf16.mxu0 %v1367_v10 }
  0x8b   : > { %994 = vmatmul.mubr.msk.bf16.vlgmr.msra.gmra.mxu0 %vm362_vm0, %v337_v9 }
  0x8c   : > { %1031 = vmatprep.mubr.msk.bf16.mxu0 %vm1368_vm1, %v1367_v10 }
 0x14b   : > { %v995_v11 = vpop.f32.mrf.mxu0 }
 0x14d   : > { %v403_v12 = vpop.f32.mrf.mxu0 }
 0x14f   : > { %v996_v13 = vpop.f32.mrf.mxu0 }
 0x150   : > { %v469_v17 = vpack.c.bf16 %v996_v13, %v995_v11 }
 0x151   : > { %v406_v14 = vpop.f32.mrf.mxu0 }
 0x152   : > { %v418_v15 = vpack.c.bf16 %v406_v14, %v403_v12 }
 0x154   : > { %998 = vmatpush3.bf16.msra.mxu1 %v418_v15 }
 0x155   : > { %1003 = vmatprep.subr.bf16.mxu1 %v1367_v10 }
 0x157   : > { %1000 = vmatmul.mubr.msk.bf16.vlgmr.msra.gmra.mxu1 %vm424_vm2, %v1607_v16 }
 0x158   : > { %1004 = vmatpush3.bf16.msra.mxu1 %v469_v17  ;;  %1005 = vmatprep.mubr.msk.bf16.mxu1 %vm1368_vm1, %v1367_v10 }
 0x159   : > { %1009 = vmatprep.subr.bf16.mxu1 %v1367_v10 }
 0x15f   : > { %1006 = vmatmul.mubr.msk.bf16.vlgmr.msra.gmra.mxu1 %vm424_vm2, %v1607_v16 }
 0x160   : > { %1010 = vmatpush3.bf16.msra.mxu1 %v1130_v0  ;;  %1017 = vmatprep.mubr.msk.bf16.mxu1 %vm1368_vm1, %v1367_v10 }
 0x161   : > { %1011 = vmatprep.subr.bf16.mxu1 %v1367_v10 }
 0x164   : > { %1012 = vmatpush3.bf16.msra.mxu1 %v1131_v1 }
 0x165   : > { %1013 = vmatprep.subr.bf16.mxu1 %v1367_v10 }
 0x168   : > { %1014 = vmatpush3.bf16.msra.mxu1 %v1132_v2 }
 0x169   : > { %1015 = vmatprep.subr.bf16.mxu1 %v1367_v10 }
 0x16c   : > { %1016 = vmatpush3.bf16.msra.mxu1 %v1133_v6 }
 0x217   : > { %v462_v18 = vpop.f32.mrf.mxu1 }
 0x218   : > { %v511_v19 = vmul.f32 0.0625, %v462_v18 }
 0x219   : > { %v1001_v20 = vpop.f32.mrf.mxu1 }
 0x21a   : > { %v513_v22 = vsub.f32 %v332_v3, %v511_v19 }
 0x21b   : > { %v465_v21 = vpop.f32.mrf.mxu1 }
 0x21c   : > { %v512_v23 = vmul.f32 0.0625, %v465_v21  ;;  %v519_v27 = vmul.f32 %v513_v22, %v513_v22 }
 0x21d   : > { %v1002_v24 = vpop.f32.mrf.mxu1 }
 0x21e   : > { %v514_v25 = vsub.f32 %v333_v4, %v512_v23 }
 0x21f   : > { %v504_v26 = vpop.f32.mrf.mxu1 }
 0x220   : > { %v520_v28 = vmul.f32 %v514_v25, %v514_v25  ;;  %v515_v29 = vmul.f32 0.0625, %v504_v26 }
 0x221   : > { %v1007_v30 = vpop.f32.mrf.mxu1 }
 0x222   : > { %v525_v31 = vpack.c.bf16 %v520_v28, %v519_v27  ;;  %v517_v33 = vsub.f32 %v334_v7, %v515_v29 }
 0x223   : > { %v507_v32 = vpop.f32.mrf.mxu1 }
 0x224   : > { %v516_v34 = vmul.f32 0.0625, %v507_v32  ;;  %1018 = vmatmul.mubr.msk.bf16.vlgmr.msra.gmra.mxu1 %vm362_vm0, %v525_v31  ;;  %v521_v37 = vmul.f32 %v517_v33, %v517_v33  ;;  %v523_v41 = vmul.f32 %v517_v33, %v513_v22 }
 0x225   : > { %v1008_v35 = vpop.f32.mrf.mxu1  ;;  %1021 = vmatprep.mubr.msk.bf16.mxu1 %vm1368_vm1, %v1367_v10 }
 0x226   : > { %v518_v36 = vsub.f32 %v335_v8, %v516_v34 }
 0x228   : > { %v522_v38 = vmul.f32 %v518_v36, %v518_v36  ;;  %v524_v40 = vmul.f32 %v518_v36, %v514_v25 }
 0x22a   : > { %v526_v39 = vpack.c.bf16 %v522_v38, %v521_v37  ;;  %v527_v42 = vpack.c.bf16 %v524_v40, %v523_v41 }
 0x22c   : > { %1022 = vmatmul.mubr.msk.bf16.gmra.mxu1 %vm362_vm0, %v526_v39 }
 0x22d   : > { %1025 = vmatprep.mubr.msk.bf16.mxu1 %vm1368_vm1, %v1367_v10 }
 0x234   : > { %1026 = vmatmul.mubr.msk.bf16.gmra.mxu1 %vm362_vm0, %v527_v42 }
 0x2e4   : > { %v571_v43 = vpop.f32.mrf.mxu1 }
 0x2e6   : > { %v1019_v44 = vpop.f32.mrf.mxu1 }
 0x2e8   : > { %v574_v45 = vpop.f32.mrf.mxu1 }
 0x2e9   : > { %v594_v56 = vpack.c.bf16 %v574_v45, %v571_v43 }
 0x2ea   : > { %v1020_v46 = vpop.f32.mrf.mxu1 }
 0x2ec   : > { %v579_v47 = vpop.f32.mrf.mxu1 }
 0x2ee   : > { %v1023_v48 = vpop.f32.mrf.mxu1 }
 0x2f0   : > { %v582_v49 = vpop.f32.mrf.mxu1 }
 0x2f1   : > { %v595_v57 = vpack.c.bf16 %v582_v49, %v579_v47 }
 0x2f2   : > { %v1024_v50 = vpop.f32.mrf.mxu1 }
 0x2f4   : > { %v587_v51 = vpop.f32.mrf.mxu1 }
 0x2f6   : > { %v1027_v52 = vpop.f32.mrf.mxu1 }
 0x2f8   : > { %v590_v53 = vpop.f32.mrf.mxu1 }
 0x2f9   : > { %v596_v54 = vpack.c.bf16 %v590_v53, %v587_v51 }
 0x2fa   : > { %v1028_v55 = vpop.f32.mrf.mxu1 }
 0x2fb   : > { %1030 = vmatpush3.bf16.msra.mxu0 %v596_v54 }
 0x2fc   : > { %1035 = vmatprep.subr.bf16.mxu0 %v1367_v10 }
 0x2fe   : > { %1032 = vmatmul.mubr.msk.bf16.vlgmr.msra.gmra.mxu0 %vm424_vm2, %v1607_v16 }
 0x2ff   : > { %1036 = vmatpush3.bf16.msra.mxu0 %v594_v56  ;;  %1037 = vmatprep.mubr.msk.bf16.mxu0 %vm1368_vm1, %v1367_v10 }
 0x300   : > { %1041 = vmatprep.subr.bf16.mxu0 %v1367_v10 }
 0x306   : > { %1038 = vmatmul.mubr.msk.bf16.vlgmr.msra.gmra.mxu0 %vm424_vm2, %v1607_v16 }
 0x307   : > { %1042 = vmatpush3.bf16.msra.mxu0 %v595_v57  ;;  %1043 = vmatprep.mubr.msk.bf16.mxu0 %vm1368_vm1, %v1367_v10 }
 0x30e   : > { %1044 = vmatmul.mubr.msk.bf16.vlgmr.msra.gmra.mxu0 %vm424_vm2, %v1607_v16 }
 0x3be   : > { %v631_v58 = vpop.f32.mrf.mxu0 }
 0x3bf   : > { %v638_v11 = vmax.f32 %v631_v58, 1e-20 }
 0x3c0   : > { %v1033_v59 = vpop.f32.mrf.mxu0 }
 0x3c2   : > { %v634_v60 = vpop.f32.mrf.mxu0 }
 0x3c3   : > { %v639_v15 = vmax.f32 %v634_v60, 1e-20 }
 0x3c4   : > { %v1034_v61 = vpop.f32.mrf.mxu0 }
 0x3c6   : > { %v674_v62 = vpop.f32.mrf.mxu0 }
 0x3c7   : > { %v675_v0 = vadd.f32 1e-20, %v674_v62 }
 0x3c8   : > { %v1039_v63 = vpop.f32.mrf.mxu0 }
 0x3c9   : > { %1135 = vrsqrt.f32 %v675_v0 }
 0x3ca   : > { %v677_v1 = vpop.f32.mrf.mxu0 }
 0x3cb   : > { %v678_v2 = vadd.f32 1e-20, %v677_v1 }
 0x3cc   : > { %v1040_v3 = vpop.f32.mrf.mxu0 }
 0x3cd   : > { %1137 = vrsqrt.f32 %v678_v2 }
 0x3ce   : > { %v719_v4 = vpop.f32.mrf.mxu0 }
 0x3cf   : > { %v720_v5 = vadd.f32 1e-20, %v719_v4 }
 0x3d0   : > { %v1045_v6 = vpop.f32.mrf.mxu0 }
 0x3d1   : > { %1139 = vrsqrt.f32 %v720_v5 }
 0x3d2   : > { %v722_v7 = vpop.f32.mrf.mxu0 }
 0x3d3   : > { %v723_v8 = vadd.f32 1e-20, %v722_v7 }
 0x3d4   : > { %v1046_v9 = vpop.f32.mrf.mxu0 }
 0x3d5   : > { %1141 = vrsqrt.f32 %v723_v8 }
 0x3d6   : > { %v1136_v10 = vpop.eup %1135 }
 0x3d7   : > { %v683_v13 = vmul.f32 %v1136_v10, %v638_v11 }
 0x3da   : > { %v1138_v12 = vpop.eup %1137 }
 0x3db   : > { %v684_v17 = vmul.f32 %v1138_v12, %v639_v15 }
 0x3de   : > { %v1140_v14 = vpop.eup %1139 }
 0x3df   : > { %v728_v16 = vmul.f32 %v1140_v14, %v683_v13 }
 0x3e1   : > { %v730_v18 = vmax.f32 %v728_v16, -1.0 }
 0x3e2   : > { %v1142_v19 = vpop.eup %1141 }
 0x3e3   : > { %v732_v20 = vsub.f32 1.0, %v730_v18  ;;  %v729_v21 = vmul.f32 %v1142_v19, %v684_v17 }
 0x3e5   : > { %vm734_vm3 = vcmp.gt.f32.partialorder %v732_v20, 0.05  ;;  %v731_v22 = vmax.f32 %v729_v21, -1.0  ;;  %v738_v25 = vsel %vm362_vm0, %v732_v20, 0.0 }
 0x3e6   : > { %v736_v24 = vsel %vm734_vm3, %v732_v20, 0.0 }
 0x3e7   : > { %v733_v23 = vsub.f32 1.0, %v731_v22  ;;  %v749_v29 = vsel %vm362_vm0, %v736_v24, 0.0 }
 0x3e9   : > { %vm735_vm4 = vcmp.gt.f32.partialorder %v733_v23, 0.05  ;;  %v739_v26 = vsel %vm362_vm0, %v733_v23, 0.0 }
 0x3ea   : > { %v737_v27 = vsel %vm735_vm4, %v733_v23, 0.0  ;;  %v740_v28 = vadd.f32 %v739_v26, %v738_v25 }
 0x3eb   : > { %v750_v30 = vsel %vm362_vm0, %v737_v27, 0.0 }
 0x3ec   : > { %v741_v31 = vrot.slane %v740_v28, 4  ;;  %v751_v32 = vadd.f32 %v750_v30, %v749_v29 }
 0x3ee   : > { %v742_v33 = vadd.f32 %v741_v31, %v740_v28  ;;  %v752_v34 = vrot.slane %v751_v32, 4 }
 0x3f0   : > { %v743_v35 = vrot.slane %v742_v33, 2  ;;  %v753_v36 = vadd.f32 %v752_v34, %v751_v32 }
 0x3f2   : > { %v744_v37 = vadd.f32 %v743_v35, %v742_v33  ;;  %v754_v38 = vrot.slane %v753_v36, 2 }
 0x3f4   : > { %v745_v39 = vrot.slane %v744_v37, 1  ;;  %v755_v40 = vadd.f32 %v754_v38, %v753_v36 }
 0x3f6   : > { %v746_v41 = vadd.f32 %v745_v39, %v744_v37  ;;  %v756_v42 = vrot.slane %v755_v40, 1 }
 0x3f8   : > { %748 = vst.msk [vmem:[%s314_s13] sm:$0x1] %vm747_vm5, %v746_v41  ;;  %v757_v43 = vadd.f32 %v756_v42, %v755_v40 }
 0x3f9   : > { %1264 = shalt.err (!%p1261_p3)
}
 0x3fa   : > { %s1265_s11 = scalar_lea.hbm %s1653_s29, 16  ;;  %s1269_s13 = scalar_lea.hbm %s1732_s4, 32 }
 0x3fb   : > { %p1266_p2 = scmp.ne.s32.totalorder %s1653_s29, %s1265_s11  ;;  %p1270_p11 = scmp.lt.s32.totalorder %s1653_s29, %s1732_s4 }
 0x3fc   : > { %p1271_p10 = scmp.lt.s32.totalorder %s1269_s13, %s1265_s11 }
 0x3fd   : > { %p1267_p0 = pnand %p1266_p2, %p1753_p7 }
 0x3fe   : > { %p1272_p6 = por %p1271_p10, %p1270_p11 }
 0x3ff   : > { %p1268_p8 = pneg %p1267_p0 }
 0x401   : > { %p1273_p12 = pnand %p1272_p6, %p1268_p8 }
 0x403   : > { %1276 = shalt.err (!%p1273_p12)
}
 0x404   : > { %1059 = dma.vmem_to_hbm [thread:$0]  (%p1753_p7), %s1655_s17, 16, %s1653_s29, %s760_s16   ;;  %758 = vst.msk [vmem:[%s320_s28] sm:$0x1] %vm747_vm5, %v757_v43 }
 0x405   : > { %s764_s22 = scalar_lea.sflag [#allocation12], %s1578_s2  ;;  %s1277_s7 = scalar_lea.vmem %s1663_s14, 16 }
 0x406   : > { %p1278_p9 = scmp.ne.s32.totalorder %s1663_s14, %s1277_s7  ;;  %s1370_s8 = smov [#allocation11]  }
 0x407   : > { %s1281_s10 = sshll.u32 %s1370_s8, 4  ;;  %s1282_s10 = int_to_ptr.vmem [resolvable:$false] %s1281_s10 }
 0x408   : > { %p1279_p13 = pnand %p1278_p9, %p1753_p7  ;;  %s1283_s30 = scalar_lea.vmem %s1282_s10, 32 }
 0x409   : > { %p1284_p1 = scmp.lt.s32.totalorder %s1663_s14, %s1282_s10  ;;  %p1285_p4 = scmp.lt.s32.totalorder %s1283_s30, %s1277_s7 }
 0x40a   : > { %p1280_p5 = pneg %p1279_p13 }
 0x40b   : > { %p1286_p3 = por %p1285_p4, %p1284_p1 }
 0x40d   : > { %p1287_p2 = pnand %p1286_p3, %p1280_p5 }
 0x40f   : > { %1290 = shalt.err (!%p1287_p2)
}
 0x410   : > { %s1291_s17 = scalar_lea.hbm %s1661_s9, 16  ;;  %s1295_s29 = scalar_lea.hbm %s1733_s5, 32 }
 0x411   : > { %p1292_p0 = scmp.ne.s32.totalorder %s1661_s9, %s1291_s17  ;;  %p1296_p10 = scmp.lt.s32.totalorder %s1661_s9, %s1733_s5 }
 0x412   : > { %p1297_p6 = scmp.lt.s32.totalorder %s1295_s29, %s1291_s17 }
 0x413   : > { %p1293_p8 = pnand %p1292_p0, %p1753_p7 }
 0x414   : > { %p1298_p12 = por %p1297_p6, %p1296_p10 }
 0x415   : > { %p1294_p11 = pneg %p1293_p8 }
 0x417   : > { %p1299_p9 = pnand %p1298_p12, %p1294_p11 }
 0x419   : > { %1302 = shalt.err (!%p1299_p9)
}
 0x41a   : > { %1060 = dma.vmem_to_hbm [thread:$0]  (%p1753_p7), %s1663_s14, 16, %s1661_s9, %s764_s22  }
 0x41b PF: > { %s801_s11 = sand.u32 1, %s1345_s18   ;;  %p1754_p13 = scmp.ne.s32.totalorder %s1740_s25, 0 }
 0x41c   : > { %p1755_p5 = scmp.ge.s32.totalorder %s1357_s21, 2  ;;  %s802_s26 = scalar_lea.sflag [#allocation4], %s801_s11 }
 0x41e   : > { %p1078_p1 = pnand %p1755_p5, %p1754_p13 }
 0x420   : > { %p1079_p4 = pneg %p1078_p1 }
 0x422   : > { %1336 = dma.done.wait (%p1079_p4), %s802_s26, 16  }
 0x423   : > { %1338 = vsyncadd (%p1079_p4), %s802_s26, 4294967280  ;;  %s810_s24 = scalar_lea.sflag [#allocation12], %s801_s11 }
 0x424   : > { %1340 = dma.done.wait (%p1079_p4), %s810_s24, 16  }
 0x425   : > { %1342 = vsyncadd (%p1079_p4), %s810_s24, 4294967280  ;;  %p26_p7 = scmp.ge.s32.totalorder %s1473_s15, 4   ;;  %s1756_s18 = smov %s1349_s19 }
 0x426   : > { %s1757_s19 = smov %s1353_s20  ;;  %s1758_s20 = smov %s1489_s27 }
 0x427   : > { %s1759_s21 = smov %s1473_s15  ;;  %28 = sbr.rel (!%p26_p7) target bundleno = 13 (0xd), region = 119 }
 0x42c   :  { %814 = vsyncpa [#allocation3], 1 }
 0x42d   :  { %816 = vsyncpa [#allocation3 + $0x1], 1 }
 0x42e   :  { %817 = vsyncpa [#allocation6], 1 }
 0x42f   :  { %819 = vsyncpa [#allocation6 + $0x1], 1 }
 0x430   :  { %820 = vsyncpa [#allocation9], 1 }
 0x431   :  { %821 = vsyncpa [#allocation4], 1 }
 0x432   :  { %823 = vsyncpa [#allocation4 + $0x1], 1 }
 0x433   :  { %824 = vsyncpa [#allocation12], 1 }
 0x434   :  { %826 = vsyncpa [#allocation12 + $0x1], 1 }

</bundles_post_ra>
